<compile_context>
chip_gen: v6e
topology: v6e:2x2x1
jax: 0.10.0
libtpu: 0.0.40
codegen_flags: <defaults>
</compile_context>

<pallas_src>
import math

import jax
import jax.numpy as jnp
from jax.experimental import pallas as pl
from jax.experimental.pallas import tpu as pltpu


def _rgcn_kernel(adj_ref, x_ref, wcat_ref, b_ref, o_ref):
    """One grid step = one tile of destination rows, ALL relations.

    adj_ref : (R, TM, N)       raw 0/1 adjacency rows for this dst tile (bf16)
    x_ref   : (N, F_in)        source node features (bf16)
    wcat_ref: (F_in, R*F_out)  all relation weights concatenated along F_out (bf16)
    b_ref   : (1, F_out)       bias (f32)
    o_ref   : (TM, F_out)      output tile (f32)
    """
    num_rels = adj_ref.shape[0]
    out_feat = o_ref.shape[-1]

    # One lane-dense weight matmul for every relation at once:
    #   XW[:, r*F_out:(r+1)*F_out] == X @ W_r   (valid since (A@X)@W == A@(X@W))
    xw = jnp.dot(x_ref[...], wcat_ref[...], preferred_element_type=jnp.float32)
    xw = xw.astype(jnp.bfloat16)  # feed bf16 back to the MXU; keep f32 accumulation

    acc = jnp.zeros(o_ref.shape, jnp.float32)
    for r in range(num_rels):  # static unroll (R is small) -> LLO interleaves MXU pushes
        a_r = adj_ref[r]                                                 # (TM, N) binary bf16
        # norm='right': divide aggregated messages by in-degree, clamped to >= 1 (DGL)
        deg = jnp.sum(a_r.astype(jnp.float32), axis=-1, keepdims=True)   # (TM, 1), exact
        inv_deg = pl.reciprocal(jnp.maximum(deg, 1.0), approx=True)      # EUP slot, ~free
        h_r = jnp.dot(a_r, xw[:, r * out_feat:(r + 1) * out_feat],
                      preferred_element_type=jnp.float32)                # (TM, F_out)
        acc = acc + inv_deg * h_r       # HeteroGraphConv aggregate='sum'

    h = acc + b_ref[...]                                   # bias (zero-initialised)
    o_ref[...] = jnp.maximum(h, 0.0).astype(o_ref.dtype)   # activation = ReLU
    # TODO(synk): dropout (p=0.0), self_loop=False, batchnorm=False -> identity, omitted.


def rel_graph_conv_layer(adj, x, weight, h_bias, *, block_m=None):
    """adj: (R, N, N) raw 0/1 adjacency, x: (N, F_in), weight: (R, F_in, F_out), h_bias: (F_out,).

    Degree normalisation (norm='right') is fused into the kernel, so `adj` is the RAW
    adjacency — no extra HBM read+write pass over the largest tensor.
    """
    R, N, _ = adj.shape
    F_in = x.shape[1]
    F_out = weight.shape[2]

    # bf16 MXU operands (0/1 adjacency is exact in bf16); accumulation stays f32 in-kernel.
    adj_bf = adj.astype(jnp.bfloat16)
    x_bf = x.astype(jnp.bfloat16)
    # Concatenate weights along F_out so the per-relation transform is one lane-dense matmul.
    wcat = jnp.swapaxes(weight, 0, 1).reshape(F_in, R * F_out).astype(jnp.bfloat16)
    bias2d = h_bias.reshape(1, F_out).astype(jnp.float32)

    # Parallel grid over destination-row tiles; relations are handled inside the kernel
    # (single grid step at small N -> no per-relation grid-step overhead).
    if block_m is None:
        block_m = N if N <= 512 else 512
    assert N % block_m == 0, "pad N to a multiple of block_m for large graphs"
    grid = (N // block_m,)

    return pl.pallas_call(
        _rgcn_kernel,
        out_shape=jax.ShapeDtypeStruct((N, F_out), jnp.float32),
        grid_spec=pltpu.PrefetchScalarGridSpec(
            num_scalar_prefetch=0,
            grid=grid,
            in_specs=[
                pl.BlockSpec((R, block_m, N), lambda i: (0, i, 0)),   # A rows for this dst tile
                pl.BlockSpec((N, F_in), lambda i: (0, 0)),            # X (same block every step)
                pl.BlockSpec((F_in, R * F_out), lambda i: (0, 0)),    # W_all (same block)
                pl.BlockSpec((1, F_out), lambda i: (0, 0)),           # bias
            ],
            out_specs=pl.BlockSpec((block_m, F_out), lambda i: (i, 0)),
        ),
        compiler_params=pltpu.CompilerParams(
            # dst-row tiles are independent -> megacore / v7x dual-TC sharding when N grows.
            dimension_semantics=("parallel",),
            # TODO(synk): for large N also tile the src axis of A and raise vmem_limit_bytes
            # (v7x has 64 MiB VMEM / 32 MiB scoped default).
        ),
    )(adj_bf, x_bf, wcat, bias2d)


def _xavier_uniform(key, shape, gain):
    # matches nn.init.xavier_uniform_ on the last two dims (fan_in, fan_out)
    fan_in, fan_out = shape[-2], shape[-1]
    a = gain * math.sqrt(6.0 / (fan_in + fan_out))
    return jax.random.uniform(key, shape, jnp.float32, minval=-a, maxval=a)


def _reference(adj, x, weight, h_bias):
    deg = jnp.clip(adj.sum(axis=2, keepdims=True), 1.0, None)   # clamp(min=1) like DGL
    a_norm = adj / deg
    h = jnp.einsum("rij,jk,rkl->il", a_norm, x, weight)
    return jnp.maximum(h + h_bias[None, :], 0.0)


if __name__ == "__main__":
    key = jax.random.PRNGKey(0)
    k_adj, k_x, k_w = jax.random.split(key, 3)

    num_rels = 3     # len(rel_names)
    N = 64           # number of nodes (single node type)
    in_feat = 32
    out_feat = 32

    # random binary adjacency per relation (RAW — normalisation happens in-kernel)
    adj = (jax.random.uniform(k_adj, (num_rels, N, N)) < 0.1).astype(jnp.float32)
    x = jax.random.normal(k_x, (N, in_feat), jnp.float32)

    # parameters: xavier_uniform with relu gain, bias zero-initialised (as in __init__)
    relu_gain = math.sqrt(2.0)
    weight = _xavier_uniform(k_w, (num_rels, in_feat, out_feat), relu_gain)
    h_bias = jnp.zeros((out_feat,), jnp.float32)

    out = rel_graph_conv_layer(adj, x, weight, h_bias)
    out = jax.block_until_ready(out)

    ref = _reference(adj, x, weight, h_bias)
    # bf16 MXU operands + approximate reciprocal -> ~1e-2 expected deviation vs f32 reference
    assert jnp.allclose(out, ref, atol=3e-2, rtol=3e-2), "mismatch vs reference"

    print("KERNEL_OK")
</pallas_src>

<mosaic_0001>
module attributes {stable_mosaic.version = 11 : i64} {
  func.func @_rgcn_kernel(%arg0: i32, %arg1: memref<3x64x64xbf16, #tpu.memory_space<vmem>>, %arg2: memref<64x32xbf16, #tpu.memory_space<vmem>>, %arg3: memref<32x96xbf16, #tpu.memory_space<vmem>>, %arg4: memref<1x32xf32, #tpu.memory_space<vmem>>, %arg5: memref<64x32xf32, #tpu.memory_space<vmem>>) attributes {dimension_semantics = [#tpu.dimension_semantics<parallel>], iteration_bounds = array<i64: 1>, scalar_prefetch = 0 : i64, scratch_operands = 0 : i64, tpu.core_type = #tpu.core_type<tc>, window_params = [{transform_indices = @transform_0, window_bounds = array<i64: 3, 64, 64>}, {pipeline_mode = #tpu.pipeline_mode<synchronous>, transform_indices = @transform_1, window_bounds = array<i64: 64, 32>}, {pipeline_mode = #tpu.pipeline_mode<synchronous>, transform_indices = @transform_2, window_bounds = array<i64: 32, 96>}, {pipeline_mode = #tpu.pipeline_mode<synchronous>, transform_indices = @transform_3, window_bounds = array<i64: 1, 32>}, {transform_indices = @transform_4, window_bounds = array<i64: 64, 32>}]} {
    %c0 = arith.constant 0 : index
    %c0_0 = arith.constant 0 : index
    %0 = vector.load %arg2[%c0, %c0_0] : memref<64x32xbf16, #tpu.memory_space<vmem>>, vector<64x32xbf16>
    %c0_1 = arith.constant 0 : index
    %c0_2 = arith.constant 0 : index
    %1 = vector.load %arg3[%c0_1, %c0_2] : memref<32x96xbf16, #tpu.memory_space<vmem>>, vector<32x96xbf16>
    %cst = arith.constant dense<0.000000e+00> : vector<64x96xf32>
    %2 = tpu.matmul %0, %1, %cst {dimension_numbers = #tpu.dot_dimension_numbers<[1], [0], [0], [1], [0, 0, 1, 1], [], []>} : vector<64x32xbf16>, vector<32x96xbf16>, vector<64x96xf32> -> vector<64x96xf32>
    %3 = arith.truncf %2 : vector<64x96xf32> to vector<64x96xbf16>
    %cst_3 = arith.constant 0.000000e+00 : f32
    %4 = vector.broadcast %cst_3 : f32 to vector<64x32xf32>
    %c0_4 = arith.constant 0 : index
    %c0_5 = arith.constant 0 : index
    %c0_6 = arith.constant 0 : index
    %5 = vector.load %arg1[%c0_4, %c0_5, %c0_6] : memref<3x64x64xbf16, #tpu.memory_space<vmem>>, vector<1x64x64xbf16>
    %6 = vector.shape_cast %5 : vector<1x64x64xbf16> to vector<64x64xbf16>
    %7 = arith.extf %6 : vector<64x64xbf16> to vector<64x64xf32>
    %cst_7 = arith.constant dense<0.000000e+00> : vector<64xf32>
    %8 = vector.multi_reduction <add>, %7, %cst_7 [1] : vector<64x64xf32> to vector<64xf32>
    %9 = vector.shape_cast %8 : vector<64xf32> to vector<64x1xf32>
    %cst_8 = arith.constant 1.000000e+00 : f32
    %10 = vector.broadcast %cst_8 : f32 to vector<64x1xf32>
    %11 = arith.maximumf %9, %10 : vector<64x1xf32>
    %12 = tpu.reciprocal %11 {approx = true} : vector<64x1xf32> -> vector<64x1xf32>
    %13 = vector.extract_strided_slice %3 {offsets = [0, 0], sizes = [64, 32], strides = [1, 1]} : vector<64x96xbf16> to vector<64x32xbf16>
    %cst_9 = arith.constant dense<0.000000e+00> : vector<64x32xf32>
    %14 = tpu.matmul %6, %13, %cst_9 {dimension_numbers = #tpu.dot_dimension_numbers<[1], [0], [0], [1], [0, 0, 1, 1], [], []>} : vector<64x64xbf16>, vector<64x32xbf16>, vector<64x32xf32> -> vector<64x32xf32>
    %15 = vector.broadcast %12 : vector<64x1xf32> to vector<64x32xf32>
    %16 = arith.mulf %15, %14 : vector<64x32xf32>
    %17 = arith.addf %4, %16 : vector<64x32xf32>
    %c1 = arith.constant 1 : index
    %c0_10 = arith.constant 0 : index
    %c0_11 = arith.constant 0 : index
    %18 = vector.load %arg1[%c1, %c0_10, %c0_11] : memref<3x64x64xbf16, #tpu.memory_space<vmem>>, vector<1x64x64xbf16>
    %19 = vector.shape_cast %18 : vector<1x64x64xbf16> to vector<64x64xbf16>
    %20 = arith.extf %19 : vector<64x64xbf16> to vector<64x64xf32>
    %cst_12 = arith.constant dense<0.000000e+00> : vector<64xf32>
    %21 = vector.multi_reduction <add>, %20, %cst_12 [1] : vector<64x64xf32> to vector<64xf32>
    %22 = vector.shape_cast %21 : vector<64xf32> to vector<64x1xf32>
    %cst_13 = arith.constant 1.000000e+00 : f32
    %23 = vector.broadcast %cst_13 : f32 to vector<64x1xf32>
    %24 = arith.maximumf %22, %23 : vector<64x1xf32>
    %25 = tpu.reciprocal %24 {approx = true} : vector<64x1xf32> -> vector<64x1xf32>
    %26 = vector.extract_strided_slice %3 {offsets = [0, 32], sizes = [64, 32], strides = [1, 1]} : vector<64x96xbf16> to vector<64x32xbf16>
    %cst_14 = arith.constant dense<0.000000e+00> : vector<64x32xf32>
    %27 = tpu.matmul %19, %26, %cst_14 {dimension_numbers = #tpu.dot_dimension_numbers<[1], [0], [0], [1], [0, 0, 1, 1], [], []>} : vector<64x64xbf16>, vector<64x32xbf16>, vector<64x32xf32> -> vector<64x32xf32>
    %28 = vector.broadcast %25 : vector<64x1xf32> to vector<64x32xf32>
    %29 = arith.mulf %28, %27 : vector<64x32xf32>
    %30 = arith.addf %17, %29 : vector<64x32xf32>
    %c2 = arith.constant 2 : index
    %c0_15 = arith.constant 0 : index
    %c0_16 = arith.constant 0 : index
    %31 = vector.load %arg1[%c2, %c0_15, %c0_16] : memref<3x64x64xbf16, #tpu.memory_space<vmem>>, vector<1x64x64xbf16>
    %32 = vector.shape_cast %31 : vector<1x64x64xbf16> to vector<64x64xbf16>
    %33 = arith.extf %32 : vector<64x64xbf16> to vector<64x64xf32>
    %cst_17 = arith.constant dense<0.000000e+00> : vector<64xf32>
    %34 = vector.multi_reduction <add>, %33, %cst_17 [1] : vector<64x64xf32> to vector<64xf32>
    %35 = vector.shape_cast %34 : vector<64xf32> to vector<64x1xf32>
    %cst_18 = arith.constant 1.000000e+00 : f32
    %36 = vector.broadcast %cst_18 : f32 to vector<64x1xf32>
    %37 = arith.maximumf %35, %36 : vector<64x1xf32>
    %38 = tpu.reciprocal %37 {approx = true} : vector<64x1xf32> -> vector<64x1xf32>
    %39 = vector.extract_strided_slice %3 {offsets = [0, 64], sizes = [64, 32], strides = [1, 1]} : vector<64x96xbf16> to vector<64x32xbf16>
    %cst_19 = arith.constant dense<0.000000e+00> : vector<64x32xf32>
    %40 = tpu.matmul %32, %39, %cst_19 {dimension_numbers = #tpu.dot_dimension_numbers<[1], [0], [0], [1], [0, 0, 1, 1], [], []>} : vector<64x64xbf16>, vector<64x32xbf16>, vector<64x32xf32> -> vector<64x32xf32>
    %41 = vector.broadcast %38 : vector<64x1xf32> to vector<64x32xf32>
    %42 = arith.mulf %41, %40 : vector<64x32xf32>
    %43 = arith.addf %30, %42 : vector<64x32xf32>
    %c0_20 = arith.constant 0 : index
    %c0_21 = arith.constant 0 : index
    %44 = vector.load %arg4[%c0_20, %c0_21] : memref<1x32xf32, #tpu.memory_space<vmem>>, vector<1x32xf32>
    %45 = vector.broadcast %44 : vector<1x32xf32> to vector<64x32xf32>
    %46 = arith.addf %43, %45 : vector<64x32xf32>
    %cst_22 = arith.constant 0.000000e+00 : f32
    %47 = vector.broadcast %cst_22 : f32 to vector<64x32xf32>
    %48 = arith.maximumf %46, %47 : vector<64x32xf32>
    %c0_23 = arith.constant 0 : index
    %c0_24 = arith.constant 0 : index
    %49 = vector.load %arg5[%c0_23, %c0_24] : memref<64x32xf32, #tpu.memory_space<vmem>>, vector<64x32xf32>
    tpu.vector_store %arg5[%c0_23, %c0_24], %48 {strides = array<i32>} : memref<64x32xf32, #tpu.memory_space<vmem>>, vector<64x32xf32>,
    return
  }
  func.func @transform_0(%arg0: i32) -> (i32, i32, i32) {
    %c0_i32 = arith.constant 0 : i32
    %c0_i32_0 = arith.constant 0 : i32
    %c0_i32_1 = arith.constant 0 : i32
    return %c0_i32, %arg0, %c0_i32_0 : i32, i32, i32
  }
  func.func @transform_1(%arg0: i32) -> (i32, i32) {
    %c0_i32 = arith.constant 0 : i32
    %c0_i32_0 = arith.constant 0 : i32
    %c0_i32_1 = arith.constant 0 : i32
    return %c0_i32, %c0_i32_0 : i32, i32
  }
  func.func @transform_2(%arg0: i32) -> (i32, i32) {
    %c0_i32 = arith.constant 0 : i32
    %c0_i32_0 = arith.constant 0 : i32
    %c0_i32_1 = arith.constant 0 : i32
    return %c0_i32, %c0_i32_0 : i32, i32
  }
  func.func @transform_3(%arg0: i32) -> (i32, i32) {
    %c0_i32 = arith.constant 0 : i32
    %c0_i32_0 = arith.constant 0 : i32
    %c0_i32_1 = arith.constant 0 : i32
    return %c0_i32, %c0_i32_0 : i32, i32
  }
  func.func @transform_4(%arg0: i32) -> (i32, i32) {
    %c0_i32 = arith.constant 0 : i32
    %c0_i32_0 = arith.constant 0 : i32
    return %arg0, %c0_i32 : i32, i32
  }
}

</mosaic_0001>

<bundles_post_ra>
// kernel: tpu_custom_call.1
= control target key start
LH: loop header
LB: loop body
LE: loop exit
PB: predicated region body
PF: predicated region fallthrough
CT: control target
= control target key end

     0   :  { %9 = vsyncpa [#allocation3], 0  ;;  %s961_s15 = smov [#allocation2]   ;;  %s1150_s0 = inlined_call_operand.hbm [shape: bf16[3,64,64], index: 0, kind: input, shape index: {}]   ;;  %s1151_s1 = inlined_call_operand.vmem [shape: bf16[64,32], index: 1, kind: input, shape index: {}]   ;;  %s1152_s2 = inlined_call_operand.vmem [shape: bf16[32,96], index: 2, kind: input, shape index: {}]   ;;  %s1153_s3 = inlined_call_operand.vmem [shape: f32[1,32], index: 3, kind: input, shape index: {}]   ;;  %s1154_s4 = inlined_call_operand.vmem [shape: f32[64,32], index: 4, kind: output, shape index: {}]  }
   0x1   :  { %s15_s16 = sshll.u32 %s961_s15, 4  ;;  %s16_s16 = int_to_ptr.vmem [resolvable:$true] %s15_s16 }
   0x2   :  { %s947_s17 = scalar_lea.vmem %s16_s16, 1536  ;;  %p952_p1 = scmp.lt.s32.totalorder %s16_s16, %s16_s16 }
   0x3   :  { %p948_p0 = scmp.ne.s32.totalorder %s16_s16, %s947_s17  ;;  %p953_p2 = scmp.lt.s32.totalorder %s947_s17, %s947_s17 }
   0x5   :  { %p954_p3 = por %p953_p2, %p952_p1 }
   0x7   :  { %p955_p4 = pnand %p954_p3, %p948_p0 }
   0x9   :  { %958 = shalt.err (!%p955_p4)
}
   0xa   :  { %s962_s18 = smov 64   ;;  %s963_s19 = smov 4  }
   0xb   :  { %21 = dma.hbm_to_vmem [thread:$0]  %s1150_s0, 1536, %s16_s16, [#allocation3], %s962_s18, %s962_s18, %s963_s19  }
   0xc   :  { %959 = dma.done.wait [#allocation3], 1536  }
   0xd   :  { %960 = vsyncadd [#allocation3], 4294965760  ;;  %v861_v0 = vld [vmem:[%s1152_s2 + $0x8] sm:$0xff]   ;;  %v862_v1 = vld [vmem:[%s1152_s2] sm:$0xff]   ;;  %vm76_vm0 = vcmask 261120   ;;  %vm174_vm1 = vcmask 523264  }
   0xe   :  { %797 = vmatprep.subr.bf16.mxu0 %v861_v0  ;;  %v863_v2 = vld [vmem:[%s1151_s1] sm:$0xff]   ;;  %v864_v3 = vld [vmem:[%s1151_s1 + $0x8] sm:$0xff]   ;;  %v865_v4 = vld [vmem:[%s1151_s1 + $0x10] sm:$0xff]   ;;  %s964_s6 = smov 96  }
   0xf   :  { %798 = vmatpush3.bf16.msra.mxu0 %v861_v0  ;;  %801 = vmatprep.mubr.msk.bf16.mxu0 %vm76_vm0, %v863_v2  ;;  %v866_v5 = vld [vmem:[%s1151_s1 + $0x18] sm:$0xff]   ;;  %v158_v6 = vld [vmem:[#allocation2] sm:$0xff]   ;;  %v160_v20 = vld [vmem:[#allocation2 + $0x8] sm:$0xff]  }
  0x10   :  { %799 = vmatprep.subr.bf16.mxu0 %v862_v1  ;;  %817 = vmatprep.mubr.msk.bf16.mxu1 %vm174_vm1, %v158_v6  ;;  %v329_v16 = vld [vmem:[#allocation2 + $0x20] sm:$0xff]   ;;  %v162_v21 = vld [vmem:[#allocation2 + $0x10] sm:$0xff]   ;;  %v164_v22 = vld [vmem:[#allocation2 + $0x18] sm:$0xff]   ;;  %v166_v24 = vunpack.c.l.bf16 %v158_v6  ;;  %v168_v26 = vunpack.c.l.bf16 %v160_v20  ;;  %v167_v27 = vunpack.c.h.bf16 %v158_v6  ;;  %v169_v29 = vunpack.c.h.bf16 %v160_v20 }
  0x11   :  { %v515_v23 = vld [vmem:[#allocation2 + $0x40] sm:$0xff]   ;;  %v170_v31 = vunpack.c.l.bf16 %v162_v21  ;;  %v171_v33 = vunpack.c.h.bf16 %v162_v21  ;;  %v172_v35 = vunpack.c.l.bf16 %v164_v22  ;;  %v173_v37 = vunpack.c.h.bf16 %v164_v22  ;;  %v1035_v42 = vld [vmem:[#allocation2 + $0x28] sm:$0xff]   ;;  %v1041_v47 = vld [vmem:[#allocation2 + $0x30] sm:$0xff]  }
  0x12   :  { %v175_v25 = vsel %vm174_vm1, %v166_v24, 0.0  ;;  %v181_v28 = vsel %vm174_vm1, %v168_v26, 0.0  ;;  %v178_v30 = vsel %vm174_vm1, %v167_v27, 0.0  ;;  %v184_v32 = vsel %vm174_vm1, %v169_v29, 0.0  ;;  %v1047_v52 = vld [vmem:[#allocation2 + $0x38] sm:$0xff]   ;;  %v517_v61 = vld [vmem:[#allocation2 + $0x48] sm:$0xff]  }
  0x13   :  { %800 = vmatpush3.bf16.msra.mxu0 %v862_v1  ;;  %v187_v34 = vsel %vm174_vm1, %v170_v31, 0.0  ;;  %v190_v36 = vsel %vm174_vm1, %v171_v33, 0.0  ;;  %v193_v38 = vsel %vm174_vm1, %v172_v35, 0.0  ;;  %v337_v39 = vunpack.c.l.bf16 %v329_v16  ;;  %v519_v2 = vld [vmem:[#allocation2 + $0x50] sm:$0xff]  }
  0x14   :  { %v196_v40 = vsel %vm174_vm1, %v173_v37, 0.0  ;;  %v338_v41 = vunpack.c.h.bf16 %v329_v16  ;;  %v339_v44 = vunpack.c.l.bf16 %v1035_v42  ;;  %v340_v46 = vunpack.c.h.bf16 %v1035_v42 }
  0x15   :  { %v345_v43 = vsel %vm174_vm1, %v337_v39, 0.0  ;;  %v341_v49 = vunpack.c.l.bf16 %v1041_v47  ;;  %v342_v51 = vunpack.c.h.bf16 %v1041_v47  ;;  %v343_v54 = vunpack.c.l.bf16 %v1047_v52 }
  0x16   :  { %802 = vmatmul.mubr.msk.bf16.vlgmr.msra.gmra.mxu0 %vm76_vm0, %v864_v3  ;;  %v348_v45 = vsel %vm174_vm1, %v338_v41, 0.0  ;;  %v351_v48 = vsel %vm174_vm1, %v339_v44, 0.0  ;;  %v354_v50 = vsel %vm174_vm1, %v340_v46, 0.0  ;;  %v344_v56 = vunpack.c.h.bf16 %v1047_v52 }
  0x17   :  { %805 = vmatprep.mubr.msk.bf16.mxu0 %vm76_vm0, %v865_v4  ;;  %v357_v53 = vsel %vm174_vm1, %v341_v49, 0.0  ;;  %v360_v55 = vsel %vm174_vm1, %v342_v51, 0.0  ;;  %v363_v57 = vsel %vm174_vm1, %v343_v54, 0.0  ;;  %v523_v58 = vunpack.c.l.bf16 %v515_v23 }
  0x18   :  { %v366_v59 = vsel %vm174_vm1, %v344_v56, 0.0  ;;  %v524_v60 = vunpack.c.h.bf16 %v515_v23  ;;  %v525_v63 = vunpack.c.l.bf16 %v517_v61  ;;  %v526_v1 = vunpack.c.h.bf16 %v517_v61 }
  0x19   :  { %v531_v62 = vsel %vm174_vm1, %v523_v58, 0.0  ;;  %v527_v4 = vunpack.c.l.bf16 %v519_v2  ;;  %v528_v6 = vunpack.c.h.bf16 %v519_v2 }
  0x1a   :  { %v534_v0 = vsel %vm174_vm1, %v524_v60, 0.0  ;;  %v537_v3 = vsel %vm174_vm1, %v525_v63, 0.0 }
  0x1e   :  { %806 = vmatmul.mubr.msk.bf16.gmra.mxu0 %vm76_vm0, %v866_v5  ;;  %v540_v5 = vsel %vm174_vm1, %v526_v1, 0.0 }
  0x1f   :  { %833 = vmatprep.mubr.msk.bf16.mxu0 %vm174_vm1, %v329_v16 }
  0xd6   :  { %v803_v7 = vpop.f32.mrf.mxu0 }
  0xd8   :  { %v123_v8 = vpop.f32.mrf.mxu0 }
  0xda   :  { %v804_v9 = vpop.f32.mrf.mxu0 }
  0xdb   :  { %v155_v18 = vpack.c.bf16 %v804_v9, %v803_v7  ;;  %v521_v7 = vld [vmem:[#allocation2 + $0x58] sm:$0xff]  }
  0xdc   :  { %v126_v10 = vpop.f32.mrf.mxu0  ;;  %v529_v9 = vunpack.c.l.bf16 %v521_v7 }
  0xdd   :  { %v154_v19 = vpack.c.bf16 %v126_v10, %v123_v8  ;;  %v543_v8 = vsel %vm174_vm1, %v527_v4, 0.0  ;;  %v546_v10 = vsel %vm174_vm1, %v528_v6, 0.0 }
  0xde   :  { %v807_v11 = vpop.f32.mrf.mxu0 }
  0xe0   :  { %v139_v12 = vpop.f32.mrf.mxu0 }
  0xe2   :  { %v808_v13 = vpop.f32.mrf.mxu0 }
  0xe3   :  { %v157_v14 = vpack.c.bf16 %v808_v13, %v807_v11  ;;  %v530_v11 = vunpack.c.h.bf16 %v521_v7 }
  0xe4   :  { %v142_v15 = vpop.f32.mrf.mxu0 }
  0xe5   :  { %v156_v17 = vpack.c.bf16 %v142_v15, %v139_v12  ;;  %415 = vrot.lane.b32.xlu0 %v157_v14, %s964_s6  ;;  %809 = vmatprep.subr.bf16.mxu1 %v157_v14  ;;  %v549_v12 = vsel %vm174_vm1, %v529_v9, 0.0  ;;  %v552_v13 = vsel %vm174_vm1, %v530_v11, 0.0 }
  0xe6   :  { %810 = vmatpush3.bf16.msra.mxu1 %v157_v14 }
  0xe7   :  { %413 = vrot.lane.b32.xlu1 %v156_v17, %s964_s6  ;;  %811 = vmatprep.subr.bf16.mxu1 %v156_v17 }
  0xe9   :  { %597 = vrot.lane.b32.xlu0 %v157_v14, %s962_s18 }
  0xea   :  { %812 = vmatpush3.bf16.msra.mxu1 %v156_v17 }
  0xeb   :  { %595 = vrot.lane.b32.xlu1 %v156_v17, %s962_s18  ;;  %813 = vmatprep.subr.bf16.mxu1 %v155_v18 }
  0xed   :  { %411 = vrot.lane.b32.xlu0 %v155_v18, %s964_s6 }
  0xee   :  { %814 = vmatpush3.bf16.msra.mxu1 %v155_v18 }
  0xef   :  { %593 = vrot.lane.b32.xlu1 %v155_v18, %s962_s18  ;;  %815 = vmatprep.subr.bf16.mxu1 %v154_v19 }
  0xf1   :  { %409 = vrot.lane.b32.xlu0 %v154_v19, %s964_s6 }
  0xf2   :  { %816 = vmatpush3.bf16.msra.mxu1 %v154_v19 }
  0xf3   :  { %591 = vrot.lane.b32.xlu1 %v154_v19, %s962_s18 }
  0xf5   :  { %818 = vmatmul.mubr.msk.bf16.vlgmr.msra.gmra.mxu1 %vm174_vm1, %v160_v20 }
  0xf6   :  { %821 = vmatprep.mubr.msk.bf16.mxu1 %vm174_vm1, %v162_v21 }
  0xfd   :  { %822 = vmatmul.mubr.msk.bf16.gmra.mxu1 %vm174_vm1, %v164_v22 }
  0xfe   :  { %849 = vmatprep.mubr.msk.bf16.mxu1 %vm174_vm1, %v515_v23 }
 0x110   :  { %176 = vadd.xlane.f32.xlu0 %v175_v25 }
 0x114   :  { %182 = vadd.xlane.f32.xlu0 %v181_v28 }
 0x117   :  { %179 = vadd.xlane.f32.xlu1 %v178_v30 }
 0x118   :  { %185 = vadd.xlane.f32.xlu0 %v184_v32 }
 0x11b   :  { %188 = vadd.xlane.f32.xlu1 %v187_v34 }
 0x11c   :  { %191 = vadd.xlane.f32.xlu0 %v190_v36 }
 0x11f   :  { %194 = vadd.xlane.f32.xlu1 %v193_v38 }
 0x120   :  { %197 = vadd.xlane.f32.xlu0 %v196_v40 }
 0x123   :  { %346 = vadd.xlane.f32.xlu1 %v345_v43 }
 0x124   :  { %349 = vadd.xlane.f32.xlu0 %v348_v45 }
 0x127   :  { %352 = vadd.xlane.f32.xlu1 %v351_v48 }
 0x128   :  { %355 = vadd.xlane.f32.xlu0 %v354_v50 }
 0x12b   :  { %358 = vadd.xlane.f32.xlu1 %v357_v53 }
 0x12c   :  { %361 = vadd.xlane.f32.xlu0 %v360_v55 }
 0x12f   :  { %364 = vadd.xlane.f32.xlu1 %v363_v57 }
 0x130   :  { %367 = vadd.xlane.f32.xlu0 %v366_v59 }
 0x133   :  { %532 = vadd.xlane.f32.xlu1 %v531_v62 }
 0x134   :  { %535 = vadd.xlane.f32.xlu0 %v534_v0 }
 0x137   :  { %538 = vadd.xlane.f32.xlu1 %v537_v3 }
 0x138   :  { %541 = vadd.xlane.f32.xlu0 %v540_v5 }
 0x13b   :  { %544 = vadd.xlane.f32.xlu1 %v543_v8 }
 0x13c   :  { %547 = vadd.xlane.f32.xlu0 %v546_v10 }
 0x13f   :  { %550 = vadd.xlane.f32.xlu1 %v549_v12 }
 0x140   :  { %553 = vadd.xlane.f32.xlu0 %v552_v13 }
 0x157   :  { %v416_v14 = vpop.permute.xlu0 %415 }
 0x158   :  { %825 = vmatprep.subr.bf16.mxu0 %v416_v14 }
 0x159   :  { %826 = vmatpush3.bf16.msra.mxu0 %v416_v14  ;;  %v414_v15 = vpop.permute.xlu1 %413 }
 0x15a   :  { %827 = vmatprep.subr.bf16.mxu0 %v414_v15 }
 0x15b   :  { %v598_v16 = vpop.permute.xlu0 %597 }
 0x15c   :  { %841 = vmatprep.subr.bf16.mxu1 %v598_v16 }
 0x15d   :  { %828 = vmatpush3.bf16.msra.mxu0 %v414_v15  ;;  %v596_v17 = vpop.permute.xlu1 %595  ;;  %842 = vmatpush3.bf16.msra.mxu1 %v598_v16 }
 0x15e   :  { %843 = vmatprep.subr.bf16.mxu1 %v596_v17 }
 0x15f   :  { %v412_v18 = vpop.permute.xlu0 %411 }
 0x160   :  { %829 = vmatprep.subr.bf16.mxu0 %v412_v18 }
 0x161   :  { %830 = vmatpush3.bf16.msra.mxu0 %v412_v18  ;;  %v594_v19 = vpop.permute.xlu1 %593  ;;  %844 = vmatpush3.bf16.msra.mxu1 %v596_v17 }
 0x162   :  { %845 = vmatprep.subr.bf16.mxu1 %v594_v19 }
 0x163   :  { %v410_v20 = vpop.permute.xlu0 %409 }
 0x164   :  { %831 = vmatprep.subr.bf16.mxu0 %v410_v20 }
 0x165   :  { %832 = vmatpush3.bf16.msra.mxu0 %v410_v20  ;;  %v592_v21 = vpop.permute.xlu1 %591  ;;  %846 = vmatpush3.bf16.msra.mxu1 %v594_v19 }
 0x166   :  { %847 = vmatprep.subr.bf16.mxu1 %v592_v21 }
 0x168   :  { %834 = vmatmul.mubr.msk.bf16.vlgmr.msra.gmra.mxu0 %vm174_vm1, %v1035_v42 }
 0x169   :  { %848 = vmatpush3.bf16.msra.mxu1 %v592_v21  ;;  %837 = vmatprep.mubr.msk.bf16.mxu0 %vm174_vm1, %v1041_v47 }
 0x16c   :  { %850 = vmatmul.mubr.msk.bf16.vlgmr.msra.gmra.mxu1 %vm174_vm1, %v517_v61 }
 0x16d   :  { %853 = vmatprep.mubr.msk.bf16.mxu1 %vm174_vm1, %v519_v2 }
 0x170   :  { %838 = vmatmul.mubr.msk.bf16.gmra.mxu0 %vm174_vm1, %v1047_v52 }
 0x174   :  { %854 = vmatmul.mubr.msk.bf16.gmra.mxu1 %vm174_vm1, %v521_v7 }
 0x199   :  { %v177_v22 = vpop.xlane.xlu0 %176 }
 0x19a   :  { %v199_v40 = vmax.f32 %v177_v22, 1.0 }
 0x19c   :  { %891 = vrcp.f32 %v199_v40 }
 0x19d   :  { %v183_v23 = vpop.xlane.xlu0 %182 }
 0x19e   :  { %v201_v41 = vmax.f32 %v183_v23, 1.0 }
 0x1a0   :  { %v180_v24 = vpop.xlane.xlu1 %179  ;;  %893 = vrcp.f32 %v201_v41  ;;  %v1100_v41 = vld [vmem:[%s1153_s3] ss:$0 sm:$0xff] }
 0x1a1   :  { %v186_v25 = vpop.xlane.xlu0 %185  ;;  %v200_v43 = vmax.f32 %v180_v24, 1.0 }
 0x1a2   :  { %v202_v44 = vmax.f32 %v186_v25, 1.0 }
 0x1a3   :  { %895 = vrcp.f32 %v200_v43 }
 0x1a4   :  { %v189_v26 = vpop.xlane.xlu1 %188  ;;  %897 = vrcp.f32 %v202_v44 }
 0x1a5   :  { %v192_v27 = vpop.xlane.xlu0 %191  ;;  %v203_v47 = vmax.f32 %v189_v26, 1.0 }
 0x1a6   :  { %v204_v48 = vmax.f32 %v192_v27, 1.0 }
 0x1a7   :  { %899 = vrcp.f32 %v203_v47 }
 0x1a8   :  { %v195_v28 = vpop.xlane.xlu1 %194  ;;  %901 = vrcp.f32 %v204_v48 }
 0x1a9   :  { %v198_v29 = vpop.xlane.xlu0 %197  ;;  %v205_v49 = vmax.f32 %v195_v28, 1.0  ;;  %v892_v3 = vpop.eup %891 }
 0x1aa   :  { %v206_v50 = vmax.f32 %v198_v29, 1.0 }
 0x1ab   :  { %903 = vrcp.f32 %v205_v49 }
 0x1ac   :  { %v347_v30 = vpop.xlane.xlu1 %346  ;;  %905 = vrcp.f32 %v206_v50 }
 0x1ad   :  { %v350_v31 = vpop.xlane.xlu0 %349  ;;  %v369_v54 = vmax.f32 %v347_v30, 1.0  ;;  %v894_v5 = vpop.eup %893 }
 0x1ae   :  { %v370_v57 = vmax.f32 %v350_v31, 1.0 }
 0x1b0   :  { %v353_v32 = vpop.xlane.xlu1 %352  ;;  %v896_v7 = vpop.eup %895 }
 0x1b1   :  { %v356_v33 = vpop.xlane.xlu0 %355  ;;  %v371_v53 = vmax.f32 %v353_v32, 1.0  ;;  %v898_v11 = vpop.eup %897 }
 0x1b2   :  { %v372_v60 = vmax.f32 %v356_v33, 1.0 }
 0x1b3   :  { %907 = vrcp.f32 %v371_v53 }
 0x1b4   :  { %v359_v34 = vpop.xlane.xlu1 %358  ;;  %909 = vrcp.f32 %v369_v54  ;;  %v900_v13 = vpop.eup %899 }
 0x1b5   :  { %v1072_v35 = vpop.xlane.xlu0 %361  ;;  %v1074_v39 = vpop.f32.mrf.mxu1  ;;  %v373_v62 = vmax.f32 %v359_v34, 1.0 }
 0x1b6   :  { %v374_v14 = vmax.f32 %v1072_v35, 1.0  ;;  %v1087_v15 = vpop.eup %901  ;;  %v314_v29 = vmul.f32 %v894_v5, %v1074_v39 }
 0x1b7   :  { %v1076_v45 = vpop.f32.mrf.mxu1 }
 0x1b8   :  { %v365_v36 = vpop.xlane.xlu1 %364  ;;  %v904_v17 = vpop.eup %903  ;;  %v312_v35 = vmul.f32 %v892_v3, %v1076_v45 }
 0x1b9   :  { %v368_v37 = vpop.xlane.xlu0 %367  ;;  %v1078_v51 = vpop.f32.mrf.mxu1  ;;  %v375_v2 = vmax.f32 %v365_v36, 1.0 }
 0x1ba   :  { %v376_v4 = vmax.f32 %v368_v37, 1.0  ;;  %v1091_v19 = vpop.eup %905  ;;  %v315_v49 = vmul.f32 %v898_v11, %v1078_v51 }
 0x1bb   :  { %v1080_v58 = vpop.f32.mrf.mxu1 }
 0x1bc   :  { %v533_v38 = vpop.xlane.xlu1 %532 }
 0x1bd   :  { %v536_v42 = vpop.xlane.xlu0 %535  ;;  %v555_v59 = vmax.f32 %v533_v38, 1.0  ;;  %v1082_v63 = vpop.f32.mrf.mxu1 }
 0x1be   :  { %v556_v9 = vmax.f32 %v536_v42, 1.0 }
 0x1bf   :  { %v1084_v8 = vpop.f32.mrf.mxu1 }
 0x1c0   :  { %v539_v46 = vpop.xlane.xlu1 %538  ;;  %v908_v20 = vpop.eup %907 }
 0x1c1   :  { %v542_v52 = vpop.xlane.xlu0 %541  ;;  %v557_v56 = vmax.f32 %v539_v46, 1.0  ;;  %v1089_v18 = vpop.f32.mrf.mxu1 }
 0x1c2   :  { %v558_v0 = vmax.f32 %v542_v52, 1.0  ;;  %v910_v22 = vpop.eup %909 }
 0x1c3   :  { %911 = vrcp.f32 %v557_v56  ;;  %v1093_v26 = vpop.f32.mrf.mxu1 }
 0x1c4   :  { %v545_v55 = vpop.xlane.xlu1 %544  ;;  %913 = vrcp.f32 %v370_v57 }
 0x1c5   :  { %v548_v61 = vpop.xlane.xlu0 %547  ;;  %915 = vrcp.f32 %v555_v59  ;;  %v559_v12 = vmax.f32 %v545_v55, 1.0  ;;  %v313_v59 = vmul.f32 %v896_v7, %v1080_v58 }
 0x1c6   :  { %917 = vrcp.f32 %v372_v60  ;;  %v560_v23 = vmax.f32 %v548_v61, 1.0 }
 0x1c7   :  { %919 = vrcp.f32 %v373_v62 }
 0x1c8   :  { %v551_v1 = vpop.xlane.xlu1 %550  ;;  %921 = vrcp.f32 %v558_v0 }
 0x1c9   :  { %v561_v6 = vmax.f32 %v551_v1, 1.0  ;;  %v554_v10 = vpop.xlane.xlu0 %553  ;;  %923 = vrcp.f32 %v375_v2  ;;  %v318_v2 = vmul.f32 %v904_v17, %v1082_v63 }
 0x1ca   :  { %925 = vrcp.f32 %v376_v4  ;;  %v562_v16 = vmax.f32 %v554_v10, 1.0 }
 0x1cb   :  { %927 = vrcp.f32 %v561_v6  ;;  %v316_v6 = vmul.f32 %v900_v13, %v1084_v8 }
 0x1cc   :  { %929 = vrcp.f32 %v556_v9 }
 0x1cd   :  { %931 = vrcp.f32 %v559_v12 }
 0x1ce   :  { %933 = vrcp.f32 %v374_v14 }
 0x1cf   :  { %935 = vrcp.f32 %v562_v16 }
 0x1d0   :  { %v912_v25 = vpop.eup %911  ;;  %937 = vrcp.f32 %v560_v23 }
 0x1d1   :  { %v914_v28 = vpop.eup %913 }
 0x1d2   :  { %v916_v31 = vpop.eup %915 }
 0x1d3   :  { %v918_v34 = vpop.eup %917 }
 0x1d4   :  { %v920_v38 = vpop.eup %919 }
 0x1d5   :  { %v922_v39 = vpop.eup %921 }
 0x1d6   :  { %v924_v48 = vpop.eup %923 }
 0x1d7   :  { %v926_v53 = vpop.eup %925 }
 0x1d8   :  { %v928_v57 = vpop.eup %927 }
 0x1d9   :  { %v930_v1 = vpop.eup %929 }
 0x1da   :  { %v932_v5 = vpop.eup %931 }
 0x1db   :  { %v934_v58 = vpop.eup %933 }
 0x228   :  { %v835_v21 = vpop.f32.mrf.mxu0 }
 0x229   :  { %v500_v24 = vmul.f32 %v908_v20, %v835_v21  ;;  %v936_v20 = vpop.eup %935  ;;  %v319_v21 = vmul.f32 %v1091_v19, %v1089_v18 }
 0x22a   :  { %v467_v27 = vpop.f32.mrf.mxu0 }
 0x22b   :  { %v498_v30 = vmul.f32 %v910_v22, %v467_v27  ;;  %v508_v36 = vadd.f32 %v500_v24, %v314_v29  ;;  %v317_v29 = vmul.f32 %v1087_v15, %v1093_v26 }
 0x22c   :  { %v836_v32 = vpop.f32.mrf.mxu0  ;;  %v851_v33 = vpop.f32.mrf.mxu1 }
 0x22d   :  { %v682_v37 = vmul.f32 %v912_v25, %v851_v33  ;;  %v501_v40 = vmul.f32 %v918_v34, %v836_v32  ;;  %v506_v44 = vadd.f32 %v498_v30, %v312_v35  ;;  %v938_v35 = vpop.eup %937 }
 0x22e   :  { %v470_v42 = vpop.f32.mrf.mxu0  ;;  %v649_v43 = vpop.f32.mrf.mxu1 }
 0x22f   :  { %v690_v46 = vadd.f32 %v682_v37, %v508_v36  ;;  %v680_v47 = vmul.f32 %v916_v31, %v649_v43  ;;  %v499_v45 = vmul.f32 %v914_v28, %v470_v42  ;;  %v509_v60 = vadd.f32 %v501_v40, %v315_v49 }
 0x230   :  { %v839_v50 = vpop.f32.mrf.mxu0  ;;  %v852_v52 = vpop.f32.mrf.mxu1 }
 0x231   :  { %v705_v54 = vadd.f32 %v1100_v41, %v690_v46  ;;  %v688_v55 = vadd.f32 %v680_v47, %v506_v44  ;;  %v504_v56 = vmul.f32 %v924_v48, %v839_v50  ;;  %v683_v61 = vmul.f32 %v922_v39, %v852_v52 }
 0x232   :  { %v483_v62 = vpop.f32.mrf.mxu0  ;;  %v652_v0 = vpop.f32.mrf.mxu1  ;;  %v507_v9 = vadd.f32 %v499_v45, %v313_v59 }
 0x233   :  { %v713_v3 = vmax.f32 %v705_v54, 0.0  ;;  %v703_v51 = vadd.f32 %v1100_v41, %v688_v55  ;;  %v502_v4 = vmul.f32 %v920_v38, %v483_v62  ;;  %v691_v10 = vadd.f32 %v683_v61, %v509_v60 }
 0x234   :  { %v681_v11 = vmul.f32 %v930_v1, %v652_v0  ;;  %v840_v12 = vpop.f32.mrf.mxu0  ;;  %v855_v14 = vpop.f32.mrf.mxu1  ;;  %v512_v63 = vadd.f32 %v504_v56, %v318_v2 }
 0x235   :  { %721 = vst.msk [vmem:[%s1154_s4 + $0x10] sm:$0xff] %vm76_vm0, %v713_v3  ;;  %v711_v7 = vmax.f32 %v703_v51, 0.0  ;;  %v505_v16 = vmul.f32 %v926_v53, %v840_v12  ;;  %v686_v17 = vmul.f32 %v928_v57, %v855_v14  ;;  %v706_v8 = vadd.f32 %v1100_v41, %v691_v10 }
 0x236   :  { %v689_v13 = vadd.f32 %v681_v11, %v507_v9  ;;  %v486_v22 = vpop.f32.mrf.mxu0  ;;  %v665_v23 = vpop.f32.mrf.mxu1  ;;  %v510_v24 = vadd.f32 %v502_v4, %v316_v6 }
 0x237   :  { %719 = vst.msk [vmem:[%s1154_s4] sm:$0xff] %vm76_vm0, %v711_v7  ;;  %v694_v25 = vadd.f32 %v686_v17, %v512_v63  ;;  %v503_v27 = vmul.f32 %v934_v58, %v486_v22  ;;  %v684_v28 = vmul.f32 %v932_v5, %v665_v23  ;;  %v714_v30 = vmax.f32 %v706_v8, 0.0 }
 0x238   :  { %v704_v18 = vadd.f32 %v1100_v41, %v689_v13  ;;  %v856_v19 = vpop.f32.mrf.mxu1  ;;  %v513_v31 = vadd.f32 %v505_v16, %v319_v21 }
 0x239   :  { %v709_v32 = vadd.f32 %v1100_v41, %v694_v25  ;;  %v692_v33 = vadd.f32 %v684_v28, %v510_v24  ;;  %v687_v34 = vmul.f32 %v936_v20, %v856_v19  ;;  %722 = vst.msk [vmem:[%s1154_s4 + $0x18] sm:$0xff] %vm76_vm0, %v714_v30  ;;  %v511_v37 = vadd.f32 %v503_v27, %v317_v29 }
 0x23a   :  { %v712_v36 = vmax.f32 %v704_v18, 0.0  ;;  %v668_v38 = vpop.f32.mrf.mxu1 }
 0x23b   :  { %v717_v40 = vmax.f32 %v709_v32, 0.0  ;;  %v707_v15 = vadd.f32 %v1100_v41, %v692_v33  ;;  %v695_v26 = vadd.f32 %v687_v34, %v513_v31  ;;  %v685_v42 = vmul.f32 %v938_v35, %v668_v38 }
 0x23c   :  { %720 = vst.msk [vmem:[%s1154_s4 + $0x8] sm:$0xff] %vm76_vm0, %v712_v36 }
 0x23d   :  { %725 = vst.msk [vmem:[%s1154_s4 + $0x30] sm:$0xff] %vm76_vm0, %v717_v40  ;;  %v715_v43 = vmax.f32 %v707_v15, 0.0  ;;  %v710_v39 = vadd.f32 %v1100_v41, %v695_v26  ;;  %v693_v44 = vadd.f32 %v685_v42, %v511_v37 }
 0x23f   :  { %723 = vst.msk [vmem:[%s1154_s4 + $0x20] sm:$0xff] %vm76_vm0, %v715_v43  ;;  %v718_v46 = vmax.f32 %v710_v39, 0.0  ;;  %v708_v47 = vadd.f32 %v1100_v41, %v693_v44 }
 0x241   :  { %726 = vst.msk [vmem:[%s1154_s4 + $0x38] sm:$0xff] %vm76_vm0, %v718_v46  ;;  %v716_v48 = vmax.f32 %v708_v47, 0.0 }
 0x243   :  { %724 = vst.msk [vmem:[%s1154_s4 + $0x28] sm:$0xff] %vm76_vm0, %v716_v48 }
 0x244   :  { %731 = vsyncpa [#allocation3], 1 }

</bundles_post_ra>
